<compile_context>
chip_gen: v5e
topology: v5e:2x2
jax: 0.10.0
libtpu: 0.0.40
codegen_flags: <defaults>
</compile_context>

<pallas_src>
import functools

import jax
import jax.numpy as jnp
from jax.experimental import pallas as pl
from jax.experimental.pallas import tpu as pltpu

LANE = 128
SUBLANE = 8


# --------------------------------------------------------------------------
# helpers
# --------------------------------------------------------------------------
def _full_spec(shape):
    # whole-array block (grid is empty -> single invocation)
    return pl.BlockSpec(shape, lambda: (0,) * len(shape))


def _round_up(x, m):
    return ((x + m - 1) // m) * m


def _pad2d(a, rows, cols, fill=0.0):
    out = jnp.full((rows, cols), fill, a.dtype)
    return out.at[: a.shape[0], : a.shape[1]].set(a)


def _fold_bn(w, b, s, t):
    # (x @ w + b) * s + t  ==  x @ (w * s) + (b * s + t)
    return w * s, b * s + t


# --------------------------------------------------------------------------
# fused Pallas kernel: all GIN layers + pooling + MLP head + log_softmax
# --------------------------------------------------------------------------
def make_fused_gin0_kernel(num_layers, hidden_pad):
    def kernel(*refs):
        adj_ref, x_ref, pool_ref = refs[0], refs[1], refs[2]
        layer_refs = refs[3:3 + 4 * num_layers]
        l1w_ref, l1b_ref, l2w_ref, l2b_ref, o_ref = refs[3 + 4 * num_layers:]

        adj = adj_ref[...]        # (N, N)  = A + I   (eps = 0 self term folded)
        pool = pool_ref[...]      # (GP, N) one-hot global_add_pool matrix
        h = x_ref[...]            # (N, FP) lane-padded node features

        gp = pool.shape[0]
        head = jnp.zeros((gp, hidden_pad), jnp.float32)

        for l in range(num_layers):
            w1 = layer_refs[4 * l][...]
            b1 = layer_refs[4 * l + 1][...]
            w2 = layer_refs[4 * l + 2][...]
            b2 = layer_refs[4 * l + 3][...]
            # GINConv (eps=0): nn(A' @ h);  BN folded into w/b, then ReLU
            agg = jnp.dot(adj, h, preferred_element_type=jnp.float32)
            z = jnp.maximum(
                jnp.dot(agg, w1, preferred_element_type=jnp.float32) + b1, 0.0)
            h = jnp.maximum(
                jnp.dot(z, w2, preferred_element_type=jnp.float32) + b2, 0.0)
            # per-layer global_add_pool + its row-slab of lin1
            pooled = jnp.dot(pool, h, preferred_element_type=jnp.float32)
            w1_slab = l1w_ref[l * hidden_pad:(l + 1) * hidden_pad, :]
            head = head + jnp.dot(pooled, w1_slab,
                                  preferred_element_type=jnp.float32)

        head = jnp.maximum(head + l1b_ref[...], 0.0)
        # dropout(p=0.5) == identity in eval mode
        logits = jnp.dot(head, l2w_ref[...],
                         preferred_element_type=jnp.float32) + l2b_ref[...]
        # padded class lanes have bias -1e30 -> contribute 0 to the lse
        m = jnp.max(logits, axis=-1, keepdims=True)
        lse = jnp.log(jnp.sum(jnp.exp(logits - m), axis=-1, keepdims=True))
        o_ref[...] = (logits - m - lse).astype(o_ref.dtype)

    return kernel


# --------------------------------------------------------------------------
# forward wrapper: host-side folding / padding + single pallas_call
# --------------------------------------------------------------------------
def gin0_forward(params, x, edge_index, batch, num_graphs):
    num_layers = len(params["convs"])
    n, f = x.shape
    hidden = params["convs"][0]["w1"].shape[1]
    num_classes = params["lin2_w"].shape[1]

    fp = _round_up(f, LANE)
    hp = _round_up(hidden, LANE)
    cp = _round_up(num_classes, LANE)
    gp = _round_up(max(num_graphs, 1), SUBLANE)

    # A' = A + I : adjacency with folded GIN self-term (eps = 0)
    src, dst = edge_index[0], edge_index[1]
    adj = (jnp.zeros((n, n), jnp.float32).at[dst, src].add(1.0)
           + jnp.eye(n, dtype=jnp.float32))
    # one-hot pooling matrix for global_add_pool (rows >= num_graphs are 0)
    pool = (batch[None, :] == jnp.arange(gp)[:, None]).astype(jnp.float32)
    # lane-padded node features
    xp = _pad2d(x, n, fp)

    # fold BN + zero-pad conv weights
    layer_flat = []
    in_pad = fp
    for p in params["convs"]:
        w1, b1 = _fold_bn(p["w1"], p["b1"], p["s1"], p["t1"])
        w2, b2 = _fold_bn(p["w2"], p["b2"], p["s2"], p["t2"])
        layer_flat += [_pad2d(w1, in_pad, hp), _pad2d(b1, 1, hp),
                       _pad2d(w2, hp, hp), _pad2d(b2, 1, hp)]
        in_pad = hp

    # lin1: scatter the (L*H, H) weight into per-layer slabs of (L*HP, HP)
    l1w = jnp.zeros((num_layers * hp, hp), jnp.float32)
    for l in range(num_layers):
        l1w = l1w.at[l * hp:l * hp + hidden, :hidden].set(
            params["lin1_w"][l * hidden:(l + 1) * hidden, :])
    l1b = _pad2d(params["lin1_b"], 1, hp)

    # lin2: padded class lanes get -1e30 bias so log_softmax ignores them
    l2w = _pad2d(params["lin2_w"], hp, cp)
    l2b = jnp.full((1, cp), -1e30, jnp.float32).at[:, :num_classes].set(
        params["lin2_b"][0])

    args = (adj, xp, pool, *layer_flat, l1w, l1b, l2w, l2b)

    # advisory cost estimate for the XLA scheduler
    flops = 0
    k_in = fp
    for _ in range(num_layers):
        flops += 2 * n * n * k_in          # A' @ h
        flops += 2 * n * k_in * hp         # @ w1
        flops += 2 * n * hp * hp           # @ w2
        flops += 2 * gp * n * hp           # pool @ h
        flops += 2 * gp * hp * hp          # pooled @ lin1 slab
        k_in = hp
    flops += 2 * gp * hp * cp              # lin2
    transcendentals = gp * cp + gp
    bytes_accessed = 4 * (sum(int(a.size) for a in args) + gp * cp)

    kernel = make_fused_gin0_kernel(num_layers, hp)
    out_p = pl.pallas_call(
        kernel,
        out_shape=jax.ShapeDtypeStruct((gp, cp), jnp.float32),
        in_specs=[_full_spec(a.shape) for a in args],
        out_specs=_full_spec((gp, cp)),
        compiler_params=pltpu.CompilerParams(
            vmem_limit_bytes=32 * 1024 * 1024),
        cost_estimate=pl.CostEstimate(flops=flops,
                                      transcendentals=transcendentals,
                                      bytes_accessed=bytes_accessed),
    )(*args)

    return out_p[:num_graphs, :num_classes]


# --------------------------------------------------------------------------
# pure-JAX reference (un-fused, un-padded) for validation
# --------------------------------------------------------------------------
def gin0_reference(params, x, edge_index, batch, num_graphs):
    n = x.shape[0]
    src, dst = edge_index[0], edge_index[1]
    adj = jnp.zeros((n, n), jnp.float32).at[dst, src].add(1.0)
    hi = jax.lax.Precision.HIGHEST
    h = x
    xs = []
    for p in params["convs"]:
        agg = h + jnp.dot(adj, h, precision=hi)
        z = jnp.maximum((jnp.dot(agg, p["w1"], precision=hi) + p["b1"])
                        * p["s1"] + p["t1"], 0.0)
        h = jnp.maximum((jnp.dot(z, p["w2"], precision=hi) + p["b2"])
                        * p["s2"] + p["t2"], 0.0)
        xs.append(h)
    xcat = jnp.concatenate(xs, axis=1)
    pool = (batch[None, :] == jnp.arange(num_graphs)[:, None]).astype(jnp.float32)
    pooled = jnp.dot(pool, xcat, precision=hi)
    hh = jnp.maximum(jnp.dot(pooled, params["lin1_w"], precision=hi)
                     + params["lin1_b"], 0.0)
    logits = jnp.dot(hh, params["lin2_w"], precision=hi) + params["lin2_b"]
    return jax.nn.log_softmax(logits, axis=-1)


# --------------------------------------------------------------------------
# deterministic synthetic parameters
# --------------------------------------------------------------------------
def _linear_params(key, fan_in, fan_out):
    kw, kb = jax.random.split(key)
    bound = 1.0 / jnp.sqrt(jnp.float32(fan_in))
    w = jax.random.uniform(kw, (fan_in, fan_out), jnp.float32, -bound, bound)
    b = jax.random.uniform(kb, (1, fan_out), jnp.float32, -bound, bound)
    return w, b


def _bn_folded(key, dim, eps=1e-5):
    kg, kb = jax.random.split(key)
    gamma = 1.0 + 0.1 * jax.random.normal(kg, (1, dim), jnp.float32)
    beta = 0.1 * jax.random.normal(kb, (1, dim), jnp.float32)
    running_mean = jnp.zeros((1, dim), jnp.float32)
    running_var = jnp.ones((1, dim), jnp.float32)
    scale = gamma / jnp.sqrt(running_var + eps)
    shift = beta - running_mean * scale
    return scale, shift


def make_gin0_params(key, num_features, hidden, num_layers, num_classes):
    keys = jax.random.split(key, 4 * num_layers + 4)
    convs = []
    in_dim = num_features
    ki = 0
    for _ in range(num_layers):
        w1, b1 = _linear_params(keys[ki], in_dim, hidden); ki += 1
        s1, t1 = _bn_folded(keys[ki], hidden);             ki += 1
        w2, b2 = _linear_params(keys[ki], hidden, hidden); ki += 1
        s2, t2 = _bn_folded(keys[ki], hidden);             ki += 1
        convs.append(dict(w1=w1, b1=b1, s1=s1, t1=t1,
                          w2=w2, b2=b2, s2=s2, t2=t2))
        in_dim = hidden
    lin1_w, lin1_b = _linear_params(keys[ki], num_layers * hidden, hidden); ki += 1
    lin2_w, lin2_b = _linear_params(keys[ki], hidden, num_classes)
    return dict(convs=convs, lin1_w=lin1_w, lin1_b=lin1_b,
                lin2_w=lin2_w, lin2_b=lin2_b)


# --------------------------------------------------------------------------
# main
# --------------------------------------------------------------------------
if __name__ == "__main__":
    key = jax.random.PRNGKey(0)
    k_feat, k_edge, k_param = jax.random.split(key, 3)

    NUM_NODES = 16
    NUM_FEATURES = 4
    HIDDEN = 32
    NUM_LAYERS = 3
    NUM_CLASSES = 4
    NUM_GRAPHS = 2
    NUM_EDGES = 40

    x = jax.random.normal(k_feat, (NUM_NODES, NUM_FEATURES), jnp.float32)
    edge_index = jax.random.randint(k_edge, (2, NUM_EDGES), 0, NUM_NODES,
                                    dtype=jnp.int32)
    # nodes 0..7 -> graph 0, nodes 8..15 -> graph 1
    batch = jnp.concatenate([jnp.zeros(8, jnp.int32), jnp.ones(8, jnp.int32)])

    params = make_gin0_params(k_param, NUM_FEATURES, HIDDEN, NUM_LAYERS,
                              NUM_CLASSES)

    fwd = jax.jit(functools.partial(gin0_forward, num_graphs=NUM_GRAPHS))
    out = fwd(params, x, edge_index, batch)
    jax.block_until_ready(out)

    assert out.shape == (NUM_GRAPHS, NUM_CLASSES)
    # log_softmax rows should sum (in prob space) to ~1
    assert jnp.allclose(jnp.sum(jnp.exp(out), axis=-1), 1.0, atol=1e-4)
    # match the un-fused reference (validates BN/self-term folding + padding)
    ref = gin0_reference(params, x, edge_index, batch, NUM_GRAPHS)
    assert jnp.allclose(out, ref, atol=1e-2, rtol=1e-2)
    print("KERNEL_OK")
</pallas_src>

<mosaic_0001>
module attributes {stable_mosaic.version = 11 : i64} {
  func.func @kernel(%arg0: memref<16x16xf32, #tpu.memory_space<vmem>>, %arg1: memref<16x128xf32, #tpu.memory_space<vmem>>, %arg2: memref<8x16xf32, #tpu.memory_space<vmem>>, %arg3: memref<128x128xf32, #tpu.memory_space<vmem>>, %arg4: memref<1x128xf32, #tpu.memory_space<vmem>>, %arg5: memref<128x128xf32, #tpu.memory_space<vmem>>, %arg6: memref<1x128xf32, #tpu.memory_space<vmem>>, %arg7: memref<128x128xf32, #tpu.memory_space<vmem>>, %arg8: memref<1x128xf32, #tpu.memory_space<vmem>>, %arg9: memref<128x128xf32, #tpu.memory_space<vmem>>, %arg10: memref<1x128xf32, #tpu.memory_space<vmem>>, %arg11: memref<128x128xf32, #tpu.memory_space<vmem>>, %arg12: memref<1x128xf32, #tpu.memory_space<vmem>>, %arg13: memref<128x128xf32, #tpu.memory_space<vmem>>, %arg14: memref<1x128xf32, #tpu.memory_space<vmem>>, %arg15: memref<384x128xf32, #tpu.memory_space<vmem>>, %arg16: memref<1x128xf32, #tpu.memory_space<vmem>>, %arg17: memref<128x128xf32, #tpu.memory_space<vmem>>, %arg18: memref<1x128xf32, #tpu.memory_space<vmem>>, %arg19: memref<8x128xf32, #tpu.memory_space<vmem>>) attributes {dimension_semantics = [], scalar_prefetch = 0 : i64, scratch_operands = 0 : i64, tpu.core_type = #tpu.core_type<tc>} {
    %c0 = arith.constant 0 : index
    %c0_0 = arith.constant 0 : index
    %0 = vector.load %arg0[%c0, %c0_0] : memref<16x16xf32, #tpu.memory_space<vmem>>, vector<16x16xf32>
    %c0_1 = arith.constant 0 : index
    %c0_2 = arith.constant 0 : index
    %1 = vector.load %arg2[%c0_1, %c0_2] : memref<8x16xf32, #tpu.memory_space<vmem>>, vector<8x16xf32>
    %c0_3 = arith.constant 0 : index
    %c0_4 = arith.constant 0 : index
    %2 = vector.load %arg1[%c0_3, %c0_4] : memref<16x128xf32, #tpu.memory_space<vmem>>, vector<16x128xf32>
    %cst = arith.constant 0.000000e+00 : f32
    %3 = vector.broadcast %cst : f32 to vector<8x128xf32>
    %c0_5 = arith.constant 0 : index
    %c0_6 = arith.constant 0 : index
    %4 = vector.load %arg3[%c0_5, %c0_6] : memref<128x128xf32, #tpu.memory_space<vmem>>, vector<128x128xf32>
    %c0_7 = arith.constant 0 : index
    %c0_8 = arith.constant 0 : index
    %5 = vector.load %arg4[%c0_7, %c0_8] : memref<1x128xf32, #tpu.memory_space<vmem>>, vector<1x128xf32>
    %c0_9 = arith.constant 0 : index
    %c0_10 = arith.constant 0 : index
    %6 = vector.load %arg5[%c0_9, %c0_10] : memref<128x128xf32, #tpu.memory_space<vmem>>, vector<128x128xf32>
    %c0_11 = arith.constant 0 : index
    %c0_12 = arith.constant 0 : index
    %7 = vector.load %arg6[%c0_11, %c0_12] : memref<1x128xf32, #tpu.memory_space<vmem>>, vector<1x128xf32>
    %cst_13 = arith.constant dense<0.000000e+00> : vector<16x128xf32>
    %8 = tpu.matmul %0, %2, %cst_13 {dimension_numbers = #tpu.dot_dimension_numbers<[1], [0], [0], [1], [0, 0, 1, 1], [], []>} : vector<16x16xf32>, vector<16x128xf32>, vector<16x128xf32> -> vector<16x128xf32>
    %cst_14 = arith.constant dense<0.000000e+00> : vector<16x128xf32>
    %9 = tpu.matmul %8, %4, %cst_14 {dimension_numbers = #tpu.dot_dimension_numbers<[1], [0], [0], [1], [0, 0, 1, 1], [], []>} : vector<16x128xf32>, vector<128x128xf32>, vector<16x128xf32> -> vector<16x128xf32>
    %10 = vector.broadcast %5 : vector<1x128xf32> to vector<16x128xf32>
    %11 = arith.addf %9, %10 : vector<16x128xf32>
    %cst_15 = arith.constant 0.000000e+00 : f32
    %12 = vector.broadcast %cst_15 : f32 to vector<16x128xf32>
    %13 = arith.maximumf %11, %12 : vector<16x128xf32>
    %cst_16 = arith.constant dense<0.000000e+00> : vector<16x128xf32>
    %14 = tpu.matmul %13, %6, %cst_16 {dimension_numbers = #tpu.dot_dimension_numbers<[1], [0], [0], [1], [0, 0, 1, 1], [], []>} : vector<16x128xf32>, vector<128x128xf32>, vector<16x128xf32> -> vector<16x128xf32>
    %15 = vector.broadcast %7 : vector<1x128xf32> to vector<16x128xf32>
    %16 = arith.addf %14, %15 : vector<16x128xf32>
    %cst_17 = arith.constant 0.000000e+00 : f32
    %17 = vector.broadcast %cst_17 : f32 to vector<16x128xf32>
    %18 = arith.maximumf %16, %17 : vector<16x128xf32>
    %cst_18 = arith.constant dense<0.000000e+00> : vector<8x128xf32>
    %19 = tpu.matmul %1, %18, %cst_18 {dimension_numbers = #tpu.dot_dimension_numbers<[1], [0], [0], [1], [0, 0, 1, 1], [], []>} : vector<8x16xf32>, vector<16x128xf32>, vector<8x128xf32> -> vector<8x128xf32>
    %c0_19 = arith.constant 0 : index
    %c0_20 = arith.constant 0 : index
    %20 = vector.load %arg15[%c0_19, %c0_20] : memref<384x128xf32, #tpu.memory_space<vmem>>, vector<128x128xf32>
    %cst_21 = arith.constant dense<0.000000e+00> : vector<8x128xf32>
    %21 = tpu.matmul %19, %20, %cst_21 {dimension_numbers = #tpu.dot_dimension_numbers<[1], [0], [0], [1], [0, 0, 1, 1], [], []>} : vector<8x128xf32>, vector<128x128xf32>, vector<8x128xf32> -> vector<8x128xf32>
    %22 = arith.addf %3, %21 : vector<8x128xf32>
    %c0_22 = arith.constant 0 : index
    %c0_23 = arith.constant 0 : index
    %23 = vector.load %arg7[%c0_22, %c0_23] : memref<128x128xf32, #tpu.memory_space<vmem>>, vector<128x128xf32>
    %c0_24 = arith.constant 0 : index
    %c0_25 = arith.constant 0 : index
    %24 = vector.load %arg8[%c0_24, %c0_25] : memref<1x128xf32, #tpu.memory_space<vmem>>, vector<1x128xf32>
    %c0_26 = arith.constant 0 : index
    %c0_27 = arith.constant 0 : index
    %25 = vector.load %arg9[%c0_26, %c0_27] : memref<128x128xf32, #tpu.memory_space<vmem>>, vector<128x128xf32>
    %c0_28 = arith.constant 0 : index
    %c0_29 = arith.constant 0 : index
    %26 = vector.load %arg10[%c0_28, %c0_29] : memref<1x128xf32, #tpu.memory_space<vmem>>, vector<1x128xf32>
    %cst_30 = arith.constant dense<0.000000e+00> : vector<16x128xf32>
    %27 = tpu.matmul %0, %18, %cst_30 {dimension_numbers = #tpu.dot_dimension_numbers<[1], [0], [0], [1], [0, 0, 1, 1], [], []>} : vector<16x16xf32>, vector<16x128xf32>, vector<16x128xf32> -> vector<16x128xf32>
    %cst_31 = arith.constant dense<0.000000e+00> : vector<16x128xf32>
    %28 = tpu.matmul %27, %23, %cst_31 {dimension_numbers = #tpu.dot_dimension_numbers<[1], [0], [0], [1], [0, 0, 1, 1], [], []>} : vector<16x128xf32>, vector<128x128xf32>, vector<16x128xf32> -> vector<16x128xf32>
    %29 = vector.broadcast %24 : vector<1x128xf32> to vector<16x128xf32>
    %30 = arith.addf %28, %29 : vector<16x128xf32>
    %cst_32 = arith.constant 0.000000e+00 : f32
    %31 = vector.broadcast %cst_32 : f32 to vector<16x128xf32>
    %32 = arith.maximumf %30, %31 : vector<16x128xf32>
    %cst_33 = arith.constant dense<0.000000e+00> : vector<16x128xf32>
    %33 = tpu.matmul %32, %25, %cst_33 {dimension_numbers = #tpu.dot_dimension_numbers<[1], [0], [0], [1], [0, 0, 1, 1], [], []>} : vector<16x128xf32>, vector<128x128xf32>, vector<16x128xf32> -> vector<16x128xf32>
    %34 = vector.broadcast %26 : vector<1x128xf32> to vector<16x128xf32>
    %35 = arith.addf %33, %34 : vector<16x128xf32>
    %cst_34 = arith.constant 0.000000e+00 : f32
    %36 = vector.broadcast %cst_34 : f32 to vector<16x128xf32>
    %37 = arith.maximumf %35, %36 : vector<16x128xf32>
    %cst_35 = arith.constant dense<0.000000e+00> : vector<8x128xf32>
    %38 = tpu.matmul %1, %37, %cst_35 {dimension_numbers = #tpu.dot_dimension_numbers<[1], [0], [0], [1], [0, 0, 1, 1], [], []>} : vector<8x16xf32>, vector<16x128xf32>, vector<8x128xf32> -> vector<8x128xf32>
    %c128 = arith.constant 128 : index
    %c0_36 = arith.constant 0 : index
    %39 = vector.load %arg15[%c128, %c0_36] : memref<384x128xf32, #tpu.memory_space<vmem>>, vector<128x128xf32>
    %cst_37 = arith.constant dense<0.000000e+00> : vector<8x128xf32>
    %40 = tpu.matmul %38, %39, %cst_37 {dimension_numbers = #tpu.dot_dimension_numbers<[1], [0], [0], [1], [0, 0, 1, 1], [], []>} : vector<8x128xf32>, vector<128x128xf32>, vector<8x128xf32> -> vector<8x128xf32>
    %41 = arith.addf %22, %40 : vector<8x128xf32>
    %c0_38 = arith.constant 0 : index
    %c0_39 = arith.constant 0 : index
    %42 = vector.load %arg11[%c0_38, %c0_39] : memref<128x128xf32, #tpu.memory_space<vmem>>, vector<128x128xf32>
    %c0_40 = arith.constant 0 : index
    %c0_41 = arith.constant 0 : index
    %43 = vector.load %arg12[%c0_40, %c0_41] : memref<1x128xf32, #tpu.memory_space<vmem>>, vector<1x128xf32>
    %c0_42 = arith.constant 0 : index
    %c0_43 = arith.constant 0 : index
    %44 = vector.load %arg13[%c0_42, %c0_43] : memref<128x128xf32, #tpu.memory_space<vmem>>, vector<128x128xf32>
    %c0_44 = arith.constant 0 : index
    %c0_45 = arith.constant 0 : index
    %45 = vector.load %arg14[%c0_44, %c0_45] : memref<1x128xf32, #tpu.memory_space<vmem>>, vector<1x128xf32>
    %cst_46 = arith.constant dense<0.000000e+00> : vector<16x128xf32>
    %46 = tpu.matmul %0, %37, %cst_46 {dimension_numbers = #tpu.dot_dimension_numbers<[1], [0], [0], [1], [0, 0, 1, 1], [], []>} : vector<16x16xf32>, vector<16x128xf32>, vector<16x128xf32> -> vector<16x128xf32>
    %cst_47 = arith.constant dense<0.000000e+00> : vector<16x128xf32>
    %47 = tpu.matmul %46, %42, %cst_47 {dimension_numbers = #tpu.dot_dimension_numbers<[1], [0], [0], [1], [0, 0, 1, 1], [], []>} : vector<16x128xf32>, vector<128x128xf32>, vector<16x128xf32> -> vector<16x128xf32>
    %48 = vector.broadcast %43 : vector<1x128xf32> to vector<16x128xf32>
    %49 = arith.addf %47, %48 : vector<16x128xf32>
    %cst_48 = arith.constant 0.000000e+00 : f32
    %50 = vector.broadcast %cst_48 : f32 to vector<16x128xf32>
    %51 = arith.maximumf %49, %50 : vector<16x128xf32>
    %cst_49 = arith.constant dense<0.000000e+00> : vector<16x128xf32>
    %52 = tpu.matmul %51, %44, %cst_49 {dimension_numbers = #tpu.dot_dimension_numbers<[1], [0], [0], [1], [0, 0, 1, 1], [], []>} : vector<16x128xf32>, vector<128x128xf32>, vector<16x128xf32> -> vector<16x128xf32>
    %53 = vector.broadcast %45 : vector<1x128xf32> to vector<16x128xf32>
    %54 = arith.addf %52, %53 : vector<16x128xf32>
    %cst_50 = arith.constant 0.000000e+00 : f32
    %55 = vector.broadcast %cst_50 : f32 to vector<16x128xf32>
    %56 = arith.maximumf %54, %55 : vector<16x128xf32>
    %cst_51 = arith.constant dense<0.000000e+00> : vector<8x128xf32>
    %57 = tpu.matmul %1, %56, %cst_51 {dimension_numbers = #tpu.dot_dimension_numbers<[1], [0], [0], [1], [0, 0, 1, 1], [], []>} : vector<8x16xf32>, vector<16x128xf32>, vector<8x128xf32> -> vector<8x128xf32>
    %c256 = arith.constant 256 : index
    %c0_52 = arith.constant 0 : index
    %58 = vector.load %arg15[%c256, %c0_52] : memref<384x128xf32, #tpu.memory_space<vmem>>, vector<128x128xf32>
    %cst_53 = arith.constant dense<0.000000e+00> : vector<8x128xf32>
    %59 = tpu.matmul %57, %58, %cst_53 {dimension_numbers = #tpu.dot_dimension_numbers<[1], [0], [0], [1], [0, 0, 1, 1], [], []>} : vector<8x128xf32>, vector<128x128xf32>, vector<8x128xf32> -> vector<8x128xf32>
    %60 = arith.addf %41, %59 : vector<8x128xf32>
    %c0_54 = arith.constant 0 : index
    %c0_55 = arith.constant 0 : index
    %61 = vector.load %arg16[%c0_54, %c0_55] : memref<1x128xf32, #tpu.memory_space<vmem>>, vector<1x128xf32>
    %62 = vector.broadcast %61 : vector<1x128xf32> to vector<8x128xf32>
    %63 = arith.addf %60, %62 : vector<8x128xf32>
    %cst_56 = arith.constant 0.000000e+00 : f32
    %64 = vector.broadcast %cst_56 : f32 to vector<8x128xf32>
    %65 = arith.maximumf %63, %64 : vector<8x128xf32>
    %c0_57 = arith.constant 0 : index
    %c0_58 = arith.constant 0 : index
    %66 = vector.load %arg17[%c0_57, %c0_58] : memref<128x128xf32, #tpu.memory_space<vmem>>, vector<128x128xf32>
    %cst_59 = arith.constant dense<0.000000e+00> : vector<8x128xf32>
    %67 = tpu.matmul %65, %66, %cst_59 {dimension_numbers = #tpu.dot_dimension_numbers<[1], [0], [0], [1], [0, 0, 1, 1], [], []>} : vector<8x128xf32>, vector<128x128xf32>, vector<8x128xf32> -> vector<8x128xf32>
    %c0_60 = arith.constant 0 : index
    %c0_61 = arith.constant 0 : index
    %68 = vector.load %arg18[%c0_60, %c0_61] : memref<1x128xf32, #tpu.memory_space<vmem>>, vector<1x128xf32>
    %69 = vector.broadcast %68 : vector<1x128xf32> to vector<8x128xf32>
    %70 = arith.addf %67, %69 : vector<8x128xf32>
    %cst_62 = arith.constant dense<0xFF800000> : vector<8xf32>
    %71 = vector.multi_reduction <maximumf>, %70, %cst_62 [1] : vector<8x128xf32> to vector<8xf32>
    %72 = vector.shape_cast %71 : vector<8xf32> to vector<8x1xf32>
    %73 = vector.broadcast %72 : vector<8x1xf32> to vector<8x128xf32>
    %74 = arith.subf %70, %73 : vector<8x128xf32>
    %75 = math.exp %74 : vector<8x128xf32>
    %cst_63 = arith.constant dense<0.000000e+00> : vector<8xf32>
    %76 = vector.multi_reduction <add>, %75, %cst_63 [1] : vector<8x128xf32> to vector<8xf32>
    %77 = vector.shape_cast %76 : vector<8xf32> to vector<8x1xf32>
    %78 = math.log %77 : vector<8x1xf32>
    %79 = vector.broadcast %72 : vector<8x1xf32> to vector<8x128xf32>
    %80 = arith.subf %70, %79 : vector<8x128xf32>
    %81 = vector.broadcast %78 : vector<8x1xf32> to vector<8x128xf32>
    %82 = arith.subf %80, %81 : vector<8x128xf32>
    %c0_64 = arith.constant 0 : index
    %c0_65 = arith.constant 0 : index
    %83 = vector.load %arg19[%c0_64, %c0_65] : memref<8x128xf32, #tpu.memory_space<vmem>>, vector<8x128xf32>
    tpu.vector_store %arg19[%c0_64, %c0_65], %82 {strides = array<i32>} : memref<8x128xf32, #tpu.memory_space<vmem>>, vector<8x128xf32>,
    return
  }
}

</mosaic_0001>

<bundles_post_ra>
// kernel: gin0_forward.1
= control target key start
LH: loop header
LB: loop body
LE: loop exit
PB: predicated region body
PF: predicated region fallthrough
CT: control target
= control target key end

     0   :  { %vm101_vm0 = vcmask 130048   ;;  %s1313_s1 = inlined_call_operand.vmem [shape: f32[16,128], index: 1, kind: input, shape index: {}]   ;;  %s1314_s0 = inlined_call_operand.vmem [shape: f32[16,16], index: 0, kind: input, shape index: {}]   ;;  %s1315_s3 = inlined_call_operand.vmem [shape: f32[128,128], index: 3, kind: input, shape index: {}]   ;;  %s1316_s4 = inlined_call_operand.vmem [shape: f32[1,128], index: 4, kind: input, shape index: {}]   ;;  %s1317_s5 = inlined_call_operand.vmem [shape: f32[128,128], index: 5, kind: input, shape index: {}]   ;;  %s1318_s6 = inlined_call_operand.vmem [shape: f32[1,128], index: 6, kind: input, shape index: {}]   ;;  %s1319_s7 = inlined_call_operand.vmem [shape: f32[128,128], index: 7, kind: input, shape index: {}]   ;;  %s1320_s2 = inlined_call_operand.vmem [shape: f32[8,16], index: 2, kind: input, shape index: {}]   ;;  %s1321_s15 = inlined_call_operand.vmem [shape: f32[384,128], index: 15, kind: input, shape index: {}]   ;;  %s1322_s8 = inlined_call_operand.vmem [shape: f32[1,128], index: 8, kind: input, shape index: {}]   ;;  %s1323_s9 = inlined_call_operand.vmem [shape: f32[128,128], index: 9, kind: input, shape index: {}]   ;;  %s1324_s10 = inlined_call_operand.vmem [shape: f32[1,128], index: 10, kind: input, shape index: {}]   ;;  %s1325_s11 = inlined_call_operand.vmem [shape: f32[128,128], index: 11, kind: input, shape index: {}]   ;;  %s1326_s13 = inlined_call_operand.vmem [shape: f32[128,128], index: 13, kind: input, shape index: {}]   ;;  %s1327_s12 = inlined_call_operand.vmem [shape: f32[1,128], index: 12, kind: input, shape index: {}]   ;;  %s1328_s14 = inlined_call_operand.vmem [shape: f32[1,128], index: 14, kind: input, shape index: {}]   ;;  %s1329_s16 = inlined_call_operand.vmem [shape: f32[1,128], index: 16, kind: input, shape index: {}]   ;;  %s1330_s17 = inlined_call_operand.vmem [shape: f32[128,128], index: 17, kind: input, shape index: {}]   ;;  %s1331_s18 = inlined_call_operand.vmem [shape: f32[1,128], index: 18, kind: input, shape index: {}]   ;;  %s1332_s19 = inlined_call_operand.vmem [shape: f32[8,128], index: 19, kind: output, shape index: {}]  }
   0x1   :  { %1336 = sst [smem:[#allocation2_spill]] %s1313_s1  ;;  %v99_v20 = vld [vmem:[%s1317_s5 + $0x78] sm:$0xff]  ;;  %v98_v21 = vld [vmem:[%s1317_s5 + $0x70] sm:$0xff]  ;;  %v97_v22 = vld [vmem:[%s1317_s5 + $0x68] sm:$0xff] }
   0x2   :  { %1337 = sst [smem:[#allocation3_spill]] %s1314_s0  ;;  %162 = vmatpush.msra.mxu2 %v99_v20  ;;  %v96_v23 = vld [vmem:[%s1317_s5 + $0x60] sm:$0xff]  ;;  %v95_v24 = vld [vmem:[%s1317_s5 + $0x58] sm:$0xff]  ;;  %v94_v25 = vld [vmem:[%s1317_s5 + $0x50] sm:$0xff] }
   0x3   :  { %1338 = sst [smem:[#allocation4_spill]] %s1315_s3  ;;  %v93_v26 = vld [vmem:[%s1317_s5 + $0x48] sm:$0xff]  ;;  %v92_v27 = vld [vmem:[%s1317_s5 + $0x40] sm:$0xff]  ;;  %v91_v28 = vld [vmem:[%s1317_s5 + $0x38] sm:$0xff] }
   0x4   :  { %1339 = sst [smem:[#allocation5_spill]] %s1316_s4  ;;  %163 = vmatpush.msra.mxu2 %v98_v21  ;;  %v90_v29 = vld [vmem:[%s1317_s5 + $0x30] sm:$0xff]  ;;  %v89_v30 = vld [vmem:[%s1317_s5 + $0x28] sm:$0xff]  ;;  %v88_v31 = vld [vmem:[%s1317_s5 + $0x20] sm:$0xff] }
   0x5   :  { %s1340_s20 = sld [smem:[#allocation2_spill]]  ;;  %v87_v32 = vld [vmem:[%s1317_s5 + $0x18] sm:$0xff]  ;;  %v86_v35 = vld [vmem:[%s1317_s5 + $0x10] sm:$0xff]  ;;  %v85_v36 = vld [vmem:[%s1317_s5 + $0x8] sm:$0xff] }
   0x6   :  { %s1341_s23 = sld [smem:[#allocation3_spill]]  ;;  %164 = vmatpush.msra.mxu2 %v97_v22  ;;  %v84_v37 = vld [vmem:[%s1317_s5] sm:$0xff]  ;;  %v241_v46 = vld [vmem:[%s1319_s7 + $0x78] sm:$0xff]  ;;  %v240_v47 = vld [vmem:[%s1319_s7 + $0x70] sm:$0xff] }
   0x7   :  { %s1342_s4 = sld [smem:[#allocation4_spill]]  ;;  %v239_v48 = vld [vmem:[%s1319_s7 + $0x68] sm:$0xff]  ;;  %v238_v49 = vld [vmem:[%s1319_s7 + $0x60] sm:$0xff]  ;;  %v237_v51 = vld [vmem:[%s1319_s7 + $0x58] sm:$0xff] }
   0x8   :  { %165 = vmatpush.msra.mxu2 %v96_v23  ;;  %s1343_s0 = sld [smem:[#allocation5_spill]]  ;;  %v656_v50 = vld [vmem:[%s1318_s6] ss:$0 sm:$0xff]  ;;  %v236_v53 = vld [vmem:[%s1319_s7 + $0x50] sm:$0xff]  ;;  %v235_v56 = vld [vmem:[%s1319_s7 + $0x48] sm:$0xff] }
   0x9   :  { %v234_v58 = vld [vmem:[%s1319_s7 + $0x40] sm:$0xff]  ;;  %v233_v61 = vld [vmem:[%s1319_s7 + $0x38] sm:$0xff]  ;;  %v232_v62 = vld [vmem:[%s1319_s7 + $0x30] sm:$0xff] }
   0xa   :  { %166 = vmatpush.msra.mxu2 %v95_v24  ;;  %v916_v60 = vld [vmem:[%s1320_s2] sm:$0xff]  ;;  %v231_v63 = vld [vmem:[%s1319_s7 + $0x28] sm:$0xff]  ;;  %v212_v20 = vld [vmem:[%s1321_s15 + $0x10] sm:$0xff] }
   0xb   :  { %v66_v0 = vld [vmem:[%s1340_s20 + $0x8] sm:$0xff]  ;;  %v65_v1 = vld [vmem:[%s1340_s20] sm:$0xff]  ;;  %v258_v23 = vld [vmem:[%s1323_s9 + $0x78] sm:$0xff] }
   0xc   :  { %122 = vmatpush.msra.mxu0 %v66_v0  ;;  %v776_v2 = vld [vmem:[%s1341_s23] sm:$0xff]  ;;  %v798_v8 = vld [vmem:[%s1341_s23 + $0x8] sm:$0xff]  ;;  %167 = vmatpush.msra.mxu2 %v94_v25  ;;  %v257_v24 = vld [vmem:[%s1323_s9 + $0x70] sm:$0xff] }
   0xd   :  { %v82_v3 = vld [vmem:[%s1342_s4 + $0x78] sm:$0xff]  ;;  %v81_v4 = vld [vmem:[%s1342_s4 + $0x70] sm:$0xff]  ;;  %v80_v5 = vld [vmem:[%s1342_s4 + $0x68] sm:$0xff] }
   0xe   :  { %134 = vmatpush.msra.mxu1 %v82_v3  ;;  %123 = vmatpush.msra.mxu0 %v65_v1  ;;  %v79_v6 = vld [vmem:[%s1342_s4 + $0x60] sm:$0xff]  ;;  %v78_v7 = vld [vmem:[%s1342_s4 + $0x58] sm:$0xff]  ;;  %v77_v9 = vld [vmem:[%s1342_s4 + $0x50] sm:$0xff] }
   0xf   :  { %646 = vmatmul.msk.f32.vlgmr.msra.gmra.mxu0 %vm101_vm0, %v776_v2  ;;  %v76_v10 = vld [vmem:[%s1342_s4 + $0x48] sm:$0xff]  ;;  %v75_v11 = vld [vmem:[%s1342_s4 + $0x40] sm:$0xff]  ;;  %v74_v12 = vld [vmem:[%s1342_s4 + $0x38] sm:$0xff]  ;;  %168 = vmatpush.msra.mxu2 %v93_v26 }
  0x10   :  { %135 = vmatpush.msra.mxu1 %v81_v4  ;;  %v73_v13 = vld [vmem:[%s1342_s4 + $0x30] sm:$0xff]  ;;  %v72_v14 = vld [vmem:[%s1342_s4 + $0x28] sm:$0xff]  ;;  %v71_v15 = vld [vmem:[%s1342_s4 + $0x20] sm:$0xff]  ;;  %286 = vmatpush.msrb.mxu0 %v241_v46 }
  0x11   :  { %v70_v16 = vld [vmem:[%s1342_s4 + $0x18] sm:$0xff]  ;;  %v69_v17 = vld [vmem:[%s1342_s4 + $0x10] sm:$0xff]  ;;  %v68_v18 = vld [vmem:[%s1342_s4 + $0x8] sm:$0xff]  ;;  %169 = vmatpush.msra.mxu2 %v92_v27 }
  0x12   :  { %136 = vmatpush.msra.mxu1 %v80_v5  ;;  %v67_v19 = vld [vmem:[%s1342_s4] sm:$0xff]  ;;  %287 = vmatpush.msrb.mxu0 %v240_v47  ;;  %v229_v1 = vld [vmem:[%s1319_s7 + $0x18] sm:$0xff]  ;;  %v228_v3 = vld [vmem:[%s1319_s7 + $0x10] sm:$0xff] }
  0x13   :  { %170 = vmatpush.msra.mxu2 %v91_v28  ;;  %v655_v38 = vld [vmem:[%s1343_s0] ss:$0 sm:$0xff]  ;;  %v227_v4 = vld [vmem:[%s1319_s7 + $0x8] sm:$0xff]  ;;  %v254_v27 = vld [vmem:[%s1323_s9 + $0x58] sm:$0xff] }
  0x14   :  { %137 = vmatpush.msra.mxu1 %v79_v6  ;;  %288 = vmatpush.msrb.mxu0 %v239_v48  ;;  %v230_v0 = vld [vmem:[%s1319_s7 + $0x20] sm:$0xff]  ;;  %v225_v6 = vld [vmem:[%s1321_s15 + $0x78] sm:$0xff]  ;;  %v211_v21 = vld [vmem:[%s1321_s15 + $0x8] sm:$0xff] }
  0x15   :  { %171 = vmatpush.msra.mxu2 %v90_v29  ;;  %v226_v5 = vld [vmem:[%s1319_s7] sm:$0xff]  ;;  %v256_v25 = vld [vmem:[%s1323_s9 + $0x68] sm:$0xff]  ;;  %v253_v29 = vld [vmem:[%s1323_s9 + $0x50] sm:$0xff] }
  0x16   :  { %138 = vmatpush.msra.mxu1 %v78_v7  ;;  %289 = vmatpush.msrb.mxu0 %v238_v49  ;;  %v224_v7 = vld [vmem:[%s1321_s15 + $0x70] sm:$0xff]  ;;  %v210_v22 = vld [vmem:[%s1321_s15] sm:$0xff] }
  0x17   :  { %647 = vmatmul.msk.f32.gmra.mxu0 %vm101_vm0, %v798_v8  ;;  %172 = vmatpush.msra.mxu2 %v89_v30  ;;  %v255_v26 = vld [vmem:[%s1323_s9 + $0x60] sm:$0xff]  ;;  %v252_v30 = vld [vmem:[%s1323_s9 + $0x48] sm:$0xff] }
  0x18   :  { %139 = vmatpush.msra.mxu1 %v77_v9  ;;  %290 = vmatpush.msrb.mxu0 %v237_v51  ;;  %v223_v9 = vld [vmem:[%s1321_s15 + $0x68] sm:$0xff]  ;;  %v373_v51 = vld [vmem:[%s1321_s15 + $0xf0] sm:$0xff] }
  0x19   :  { %173 = vmatpush.msra.mxu2 %v88_v31  ;;  %v251_v31 = vld [vmem:[%s1323_s9 + $0x40] sm:$0xff] }
  0x1a   :  { %140 = vmatpush.msra.mxu1 %v76_v10  ;;  %291 = vmatpush.msrb.mxu0 %v236_v53  ;;  %v222_v10 = vld [vmem:[%s1321_s15 + $0x60] sm:$0xff]  ;;  %v372_v53 = vld [vmem:[%s1321_s15 + $0xe8] sm:$0xff] }
  0x1b   :  { %174 = vmatpush.msra.mxu2 %v87_v32  ;;  %v250_v32 = vld [vmem:[%s1323_s9 + $0x38] sm:$0xff] }
  0x1c   :  { %141 = vmatpush.msra.mxu1 %v75_v11  ;;  %292 = vmatpush.msrb.mxu0 %v235_v56  ;;  %v221_v11 = vld [vmem:[%s1321_s15 + $0x58] sm:$0xff]  ;;  %v371_v56 = vld [vmem:[%s1321_s15 + $0xe0] sm:$0xff] }
  0x1d   :  { %175 = vmatpush.msra.mxu2 %v86_v35  ;;  %v248_v35 = vld [vmem:[%s1323_s9 + $0x28] sm:$0xff] }
  0x1e   :  { %142 = vmatpush.msra.mxu1 %v74_v12  ;;  %293 = vmatpush.msrb.mxu0 %v234_v58  ;;  %v220_v12 = vld [vmem:[%s1321_s15 + $0x50] sm:$0xff]  ;;  %v427_v58 = vld [vmem:[%s1325_s11 + $0x60] sm:$0xff] }
  0x1f   :  { %176 = vmatpush.msra.mxu2 %v85_v36  ;;  %v247_v36 = vld [vmem:[%s1323_s9 + $0x20] sm:$0xff] }
  0x20   :  { %143 = vmatpush.msra.mxu1 %v73_v13  ;;  %294 = vmatpush.msrb.mxu0 %v233_v61  ;;  %v219_v13 = vld [vmem:[%s1321_s15 + $0x48] sm:$0xff]  ;;  %v426_v61 = vld [vmem:[%s1325_s11 + $0x58] sm:$0xff] }
  0x21   :  { %177 = vmatpush.msra.mxu2 %v84_v37  ;;  %v246_v37 = vld [vmem:[%s1323_s9 + $0x18] sm:$0xff] }
  0x22   :  { %144 = vmatpush.msra.mxu1 %v72_v14  ;;  %295 = vmatpush.msrb.mxu0 %v232_v62  ;;  %v218_v14 = vld [vmem:[%s1321_s15 + $0x40] sm:$0xff] }
  0x24   :  { %145 = vmatpush.msra.mxu1 %v71_v15  ;;  %296 = vmatpush.msrb.mxu0 %v231_v63  ;;  %v217_v15 = vld [vmem:[%s1321_s15 + $0x38] sm:$0xff]  ;;  %v369_v63 = vld [vmem:[%s1321_s15 + $0xd0] sm:$0xff] }
  0x26   :  { %146 = vmatpush.msra.mxu1 %v70_v16  ;;  %297 = vmatpush.msrb.mxu0 %v230_v0  ;;  %v216_v16 = vld [vmem:[%s1321_s15 + $0x30] sm:$0xff] }
  0x28   :  { %147 = vmatpush.msra.mxu1 %v69_v17  ;;  %298 = vmatpush.msrb.mxu0 %v229_v1  ;;  %v215_v17 = vld [vmem:[%s1321_s15 + $0x28] sm:$0xff] }
  0x2a   :  { %148 = vmatpush.msra.mxu1 %v68_v18  ;;  %299 = vmatpush.msrb.mxu0 %v228_v3  ;;  %v214_v18 = vld [vmem:[%s1321_s15 + $0x20] sm:$0xff]  ;;  %v425_v3 = vld [vmem:[%s1325_s11 + $0x50] sm:$0xff] }
  0x2c   :  { %149 = vmatpush.msra.mxu1 %v67_v19  ;;  %300 = vmatpush.msrb.mxu0 %v227_v4  ;;  %v213_v19 = vld [vmem:[%s1321_s15 + $0x18] sm:$0xff]  ;;  %v368_v4 = vld [vmem:[%s1321_s15 + $0xc8] sm:$0xff] }
  0x2e   :  { %301 = vmatpush.msrb.mxu0 %v226_v5 }
  0x30   :  { %395 = vmatpush.msra.mxu0 %v225_v6  ;;  %v424_v6 = vld [vmem:[%s1325_s11 + $0x48] sm:$0xff] }
  0x32   :  { %396 = vmatpush.msra.mxu0 %v224_v7  ;;  %v367_v7 = vld [vmem:[%s1321_s15 + $0xc0] sm:$0xff] }
  0x34   :  { %397 = vmatpush.msra.mxu0 %v223_v9 }
  0x36   :  { %398 = vmatpush.msra.mxu0 %v222_v10  ;;  %v423_v10 = vld [vmem:[%s1325_s11 + $0x40] sm:$0xff] }
  0x38   :  { %399 = vmatpush.msra.mxu0 %v221_v11  ;;  %v366_v11 = vld [vmem:[%s1321_s15 + $0xb8] sm:$0xff] }
  0x3a   :  { %400 = vmatpush.msra.mxu0 %v220_v12  ;;  %v422_v12 = vld [vmem:[%s1325_s11 + $0x38] sm:$0xff] }
  0x3c   :  { %401 = vmatpush.msra.mxu0 %v219_v13  ;;  %v365_v13 = vld [vmem:[%s1321_s15 + $0xb0] sm:$0xff] }
  0x3e   :  { %402 = vmatpush.msra.mxu0 %v218_v14  ;;  %v421_v14 = vld [vmem:[%s1325_s11 + $0x30] sm:$0xff] }
  0x40   :  { %403 = vmatpush.msra.mxu0 %v217_v15  ;;  %v364_v15 = vld [vmem:[%s1321_s15 + $0xa8] sm:$0xff] }
  0x42   :  { %404 = vmatpush.msra.mxu0 %v216_v16  ;;  %v420_v16 = vld [vmem:[%s1325_s11 + $0x28] sm:$0xff] }
  0x44   :  { %405 = vmatpush.msra.mxu0 %v215_v17  ;;  %v363_v17 = vld [vmem:[%s1321_s15 + $0xa0] sm:$0xff] }
  0x46   :  { %406 = vmatpush.msra.mxu0 %v214_v18  ;;  %v362_v18 = vld [vmem:[%s1321_s15 + $0x98] sm:$0xff] }
  0x48   :  { %407 = vmatpush.msra.mxu0 %v213_v19  ;;  %v361_v19 = vld [vmem:[%s1321_s15 + $0x90] sm:$0xff] }
  0x4a   :  { %408 = vmatpush.msra.mxu0 %v212_v20  ;;  %v360_v20 = vld [vmem:[%s1321_s15 + $0x88] sm:$0xff] }
  0x4c   :  { %409 = vmatpush.msra.mxu0 %v211_v21  ;;  %v359_v21 = vld [vmem:[%s1321_s15 + $0x80] sm:$0xff] }
  0x4e   :  { %410 = vmatpush.msra.mxu0 %v210_v22  ;;  %v418_v22 = vld [vmem:[%s1325_s11 + $0x18] sm:$0xff] }
  0x8c   :  { %v125_v33 = vpop.f32.mrf.mxu0 }
  0x8d   :  { %150 = vmatmul.f32.vlgmr.msra.gmra.mxu1 %v125_v33 }
  0x94   :  { %v128_v34 = vpop.f32.mrf.mxu0 }
  0x95   :  { %153 = vmatmul.f32.gmra.mxu1 %v128_v34  ;;  %v249_v34 = vld [vmem:[%s1323_s9 + $0x30] sm:$0xff] }
 0x10a   :  { %v151_v39 = vpop.f32.mrf.mxu1 }
 0x10b   :  { %v152_v40 = vadd.f32 %v655_v38, %v151_v39  ;;  %v245_v39 = vld [vmem:[%s1323_s9 + $0x10] sm:$0xff] }
 0x10d   :  { %v157_v41 = vmax.f32 %v152_v40, 0.0  ;;  %v244_v40 = vld [vmem:[%s1323_s9 + $0x8] sm:$0xff] }
 0x10f   :  { %178 = vmatmul.f32.vlgmr.msra.gmra.mxu2 %v157_v41  ;;  %v243_v41 = vld [vmem:[%s1323_s9] sm:$0xff] }
 0x112   :  { %v154_v42 = vpop.f32.mrf.mxu1 }
 0x113   :  { %v155_v43 = vadd.f32 %v655_v38, %v154_v42  ;;  %v657_v42 = vld [vmem:[%s1322_s8] ss:$0 sm:$0xff] }
 0x115   :  { %v158_v44 = vmax.f32 %v155_v43, 0.0 }
 0x117   :  { %181 = vmatmul.f32.gmra.mxu2 %v158_v44 }
 0x192   :  { %v179_v45 = vpop.f32.mrf.mxu2 }
 0x193   :  { %v180_v54 = vadd.f32 %v656_v50, %v179_v45 }
 0x195   :  { %v185_v59 = vmax.f32 %v180_v54, 0.0  ;;  %v429_v54 = vld [vmem:[%s1325_s11 + $0x70] sm:$0xff] }
 0x19a   :  { %v182_v52 = vpop.f32.mrf.mxu2 }
 0x19b   :  { %v183_v55 = vadd.f32 %v656_v50, %v182_v52  ;;  %v374_v50 = vld [vmem:[%s1321_s15 + $0xf8] sm:$0xff] }
 0x19c   :  { %375 = vmatpush.msrb.mxu2 %v374_v50  ;;  %v430_v52 = vld [vmem:[%s1325_s11 + $0x78] sm:$0xff] }
 0x19d   :  { %v186_v57 = vmax.f32 %v183_v55, 0.0  ;;  %v428_v55 = vld [vmem:[%s1325_s11 + $0x68] sm:$0xff] }
 0x19e   :  { %376 = vmatpush.msrb.mxu2 %v373_v51  ;;  %v563_v51 = vld [vmem:[%s1321_s15 + $0x178] sm:$0xff] }
 0x19f   :  { %204 = vmatpush.msra.mxu3 %v186_v57 }
 0x1a0   :  { %377 = vmatpush.msrb.mxu2 %v372_v53  ;;  %v561_v53 = vld [vmem:[%s1321_s15 + $0x168] sm:$0xff] }
 0x1a1   :  { %205 = vmatpush.msra.mxu3 %v185_v59 }
 0x1a2   :  { %648 = vmatmul.msk.f32.vlgmr.msra.gmra.mxu3 %vm101_vm0, %v916_v60  ;;  %378 = vmatpush.msrb.mxu2 %v371_v56  ;;  %v558_v56 = vld [vmem:[%s1321_s15 + $0x150] sm:$0xff] }
 0x1a3   :  { %274 = vmatpush.msrb.mxu3 %v186_v57  ;;  %v658_v57 = vld [vmem:[%s1324_s10] ss:$0 sm:$0xff] }
 0x1a5   :  { %275 = vmatpush.msrb.mxu3 %v185_v59  ;;  %v370_v59 = vld [vmem:[%s1321_s15 + $0xd8] sm:$0xff] }
 0x1a6   :  { %379 = vmatpush.msrb.mxu2 %v370_v59  ;;  %v555_v59 = vld [vmem:[%s1321_s15 + $0x138] sm:$0xff] }
 0x1a7   :  { %314 = vmatpush.msra.mxu3 %v258_v23  ;;  %v417_v23 = vld [vmem:[%s1325_s11 + $0x10] sm:$0xff] }
 0x1a8   :  { %380 = vmatpush.msrb.mxu2 %v369_v63  ;;  %v553_v63 = vld [vmem:[%s1321_s15 + $0x128] sm:$0xff] }
 0x1a9   :  { %315 = vmatpush.msra.mxu3 %v257_v24  ;;  %v415_v24 = vld [vmem:[%s1325_s11] sm:$0xff] }
 0x1aa   :  { %649 = vmatmul.msk.f32.vlgmr.msrb.gmra.mxu3 %vm101_vm0, %v776_v2  ;;  %381 = vmatpush.msrb.mxu2 %v368_v4 }
 0x1ab   :  { %316 = vmatpush.msra.mxu3 %v256_v25  ;;  %v447_v25 = vld [vmem:[%s1326_s13 + $0x78] sm:$0xff] }
 0x1ac   :  { %382 = vmatpush.msrb.mxu2 %v367_v7 }
 0x1ad   :  { %317 = vmatpush.msra.mxu3 %v255_v26  ;;  %v446_v26 = vld [vmem:[%s1326_s13 + $0x70] sm:$0xff] }
 0x1ae   :  { %383 = vmatpush.msrb.mxu2 %v366_v11 }
 0x1af   :  { %318 = vmatpush.msra.mxu3 %v254_v27  ;;  %v445_v27 = vld [vmem:[%s1326_s13 + $0x68] sm:$0xff] }
 0x1b0   :  { %384 = vmatpush.msrb.mxu2 %v365_v13  ;;  %v606_v13 = vld [vmem:[%s1330_s17 + $0x78] sm:$0xff] }
 0x1b1   :  { %319 = vmatpush.msra.mxu3 %v253_v29  ;;  %v443_v29 = vld [vmem:[%s1326_s13 + $0x58] sm:$0xff] }
 0x1b2   :  { %650 = vmatmul.msk.f32.gmra.mxu3 %vm101_vm0, %v798_v8  ;;  %385 = vmatpush.msrb.mxu2 %v364_v15  ;;  %v604_v15 = vld [vmem:[%s1330_s17 + $0x68] sm:$0xff] }
 0x1b3   :  { %320 = vmatpush.msra.mxu3 %v252_v30  ;;  %v442_v30 = vld [vmem:[%s1326_s13 + $0x50] sm:$0xff] }
 0x1b4   :  { %386 = vmatpush.msrb.mxu2 %v363_v17  ;;  %v601_v17 = vld [vmem:[%s1330_s17 + $0x50] sm:$0xff] }
 0x1b5   :  { %321 = vmatpush.msra.mxu3 %v251_v31  ;;  %v441_v31 = vld [vmem:[%s1326_s13 + $0x48] sm:$0xff] }
 0x1b6   :  { %387 = vmatpush.msrb.mxu2 %v362_v18  ;;  %v600_v18 = vld [vmem:[%s1330_s17 + $0x48] sm:$0xff] }
 0x1b7   :  { %322 = vmatpush.msra.mxu3 %v250_v32  ;;  %v440_v32 = vld [vmem:[%s1326_s13 + $0x40] sm:$0xff] }
 0x1b8   :  { %388 = vmatpush.msrb.mxu2 %v361_v19  ;;  %v599_v19 = vld [vmem:[%s1330_s17 + $0x40] sm:$0xff] }
 0x1b9   :  { %323 = vmatpush.msra.mxu3 %v249_v34 }
 0x1ba   :  { %389 = vmatpush.msrb.mxu2 %v360_v20  ;;  %v598_v20 = vld [vmem:[%s1330_s17 + $0x38] sm:$0xff] }
 0x1bb   :  { %324 = vmatpush.msra.mxu3 %v248_v35 }
 0x1bc   :  { %390 = vmatpush.msrb.mxu2 %v359_v21  ;;  %v597_v21 = vld [vmem:[%s1330_s17 + $0x30] sm:$0xff] }
 0x1bd   :  { %325 = vmatpush.msra.mxu3 %v247_v36 }
 0x1be   :  { %611 = vmatpush.msra.mxu2 %v606_v13 }
 0x1bf   :  { %326 = vmatpush.msra.mxu3 %v246_v37  ;;  %v438_v37 = vld [vmem:[%s1326_s13 + $0x30] sm:$0xff] }
 0x1c1   :  { %327 = vmatpush.msra.mxu3 %v245_v39  ;;  %v436_v39 = vld [vmem:[%s1326_s13 + $0x20] sm:$0xff] }
 0x1c3   :  { %328 = vmatpush.msra.mxu3 %v244_v40  ;;  %v435_v40 = vld [vmem:[%s1326_s13 + $0x18] sm:$0xff] }
 0x1c5   :  { %329 = vmatpush.msra.mxu3 %v243_v41  ;;  %v434_v41 = vld [vmem:[%s1326_s13 + $0x10] sm:$0xff] }
 0x1c7   :  { %475 = vmatpush.msrb.mxu3 %v430_v52  ;;  %v562_v52 = vld [vmem:[%s1321_s15 + $0x170] sm:$0xff] }
 0x1c9   :  { %476 = vmatpush.msrb.mxu3 %v429_v54  ;;  %v560_v54 = vld [vmem:[%s1321_s15 + $0x160] sm:$0xff] }
 0x1cb   :  { %477 = vmatpush.msrb.mxu3 %v428_v55  ;;  %v559_v55 = vld [vmem:[%s1321_s15 + $0x158] sm:$0xff] }
 0x1cd   :  { %478 = vmatpush.msrb.mxu3 %v427_v58  ;;  %v556_v58 = vld [vmem:[%s1321_s15 + $0x140] sm:$0xff] }
 0x1cf   :  { %479 = vmatpush.msrb.mxu3 %v426_v61 }
 0x1d1   :  { %480 = vmatpush.msrb.mxu3 %v425_v3  ;;  %v551_v3 = vld [vmem:[%s1321_s15 + $0x118] sm:$0xff] }
 0x1d3   :  { %481 = vmatpush.msrb.mxu3 %v424_v6 }
 0x1d5   :  { %482 = vmatpush.msrb.mxu3 %v423_v10 }
 0x1d7   :  { %483 = vmatpush.msrb.mxu3 %v422_v12  ;;  %v548_v12 = vld [vmem:[%s1321_s15 + $0x100] sm:$0xff] }
 0x1d9   :  { %484 = vmatpush.msrb.mxu3 %v421_v14  ;;  %v605_v14 = vld [vmem:[%s1330_s17 + $0x70] sm:$0xff] }
 0x1da   :  { %612 = vmatpush.msra.mxu2 %v605_v14 }
 0x1db   :  { %485 = vmatpush.msrb.mxu3 %v420_v16  ;;  %v602_v16 = vld [vmem:[%s1330_s17 + $0x58] sm:$0xff] }
 0x1dc   :  { %613 = vmatpush.msra.mxu2 %v604_v15 }
 0x225   :  { %v207_v28 = vpop.f32.mrf.mxu3 }
 0x22d   :  { %v277_v33 = vpop.f32.mrf.mxu3 }
 0x22e   :  { %302 = vmatmul.f32.vlgmr.msrb.gmra.mxu0 %v277_v33  ;;  %v439_v33 = vld [vmem:[%s1326_s13 + $0x38] sm:$0xff] }
 0x22f   :  { %564 = vmatpush.msrb.mxu0 %v563_v51 }
 0x231   :  { %565 = vmatpush.msrb.mxu0 %v562_v52 }
 0x233   :  { %566 = vmatpush.msrb.mxu0 %v561_v53 }
 0x235   :  { %v280_v38 = vpop.f32.mrf.mxu3  ;;  %567 = vmatpush.msrb.mxu0 %v560_v54 }
 0x236   :  { %305 = vmatmul.f32.gmra.mxu0 %v280_v38  ;;  %v437_v38 = vld [vmem:[%s1326_s13 + $0x28] sm:$0xff] }
 0x237   :  { %568 = vmatpush.msrb.mxu0 %v559_v55 }
 0x239   :  { %569 = vmatpush.msrb.mxu0 %v558_v56 }
 0x23e   :  { %411 = vmatmul.f32.vlgmr.msra.gmra.mxu0 %v207_v28  ;;  %v444_v28 = vld [vmem:[%s1326_s13 + $0x60] sm:$0xff] }
 0x2ab   :  { %v303_v43 = vpop.f32.mrf.mxu0 }
 0x2ac   :  { %v304_v44 = vadd.f32 %v657_v42, %v303_v43  ;;  %v432_v43 = vld [vmem:[%s1326_s13] sm:$0xff] }
 0x2ae   :  { %v309_v45 = vmax.f32 %v304_v44, 0.0  ;;  %v659_v44 = vld [vmem:[%s1327_s12] ss:$0 sm:$0xff] }
 0x2b0   :  { %330 = vmatmul.f32.vlgmr.msra.gmra.mxu3 %v309_v45 }
 0x2b3   :  { %v306_v46 = vpop.f32.mrf.mxu0 }
 0x2b4   :  { %v307_v47 = vadd.f32 %v657_v42, %v306_v46  ;;  %v433_v42 = vld [vmem:[%s1326_s13 + $0x8] sm:$0xff] }
 0x2b6   :  { %v310_v48 = vmax.f32 %v307_v47, 0.0 }
 0x2b8   :  { %333 = vmatmul.f32.gmra.mxu3 %v310_v48 }
 0x333   :  { %v331_v49 = vpop.f32.mrf.mxu3 }
 0x334   :  { %v332_v0 = vadd.f32 %v658_v57, %v331_v49 }
 0x336   :  { %v337_v9 = vmax.f32 %v332_v0, 0.0  ;;  %v552_v0 = vld [vmem:[%s1321_s15 + $0x120] sm:$0xff] }
 0x33b   :  { %v334_v62 = vpop.f32.mrf.mxu3 }
 0x33c   :  { %v335_v1 = vadd.f32 %v658_v57, %v334_v62  ;;  %v557_v57 = vld [vmem:[%s1321_s15 + $0x148] sm:$0xff]  ;;  %v554_v62 = vld [vmem:[%s1321_s15 + $0x130] sm:$0xff] }
 0x33d   :  { %570 = vmatpush.msrb.mxu0 %v557_v57 }
 0x33e   :  { %v338_v5 = vmax.f32 %v335_v1, 0.0  ;;  %v660_v1 = vld [vmem:[%s1328_s14] ss:$0 sm:$0xff] }
 0x33f   :  { %571 = vmatpush.msrb.mxu0 %v556_v58 }
 0x340   :  { %353 = vmatpush.msrb.mxu1 %v338_v5 }
 0x341   :  { %572 = vmatpush.msrb.mxu0 %v555_v59 }
 0x342   :  { %354 = vmatpush.msrb.mxu1 %v337_v9 }
 0x343   :  { %651 = vmatmul.msk.f32.vlgmr.msrb.gmra.mxu1 %vm101_vm0, %v916_v60  ;;  %573 = vmatpush.msrb.mxu0 %v554_v62 }
 0x344   :  { %463 = vmatpush.msra.mxu1 %v338_v5  ;;  %v550_v5 = vld [vmem:[%s1321_s15 + $0x110] sm:$0xff] }
 0x345   :  { %574 = vmatpush.msrb.mxu0 %v553_v63 }
 0x346   :  { %464 = vmatpush.msra.mxu1 %v337_v9  ;;  %v549_v9 = vld [vmem:[%s1321_s15 + $0x108] sm:$0xff] }
 0x347   :  { %575 = vmatpush.msrb.mxu0 %v552_v0 }
 0x348   :  { %503 = vmatpush.msrb.mxu1 %v447_v25  ;;  %v592_v25 = vld [vmem:[%s1330_s17 + $0x8] sm:$0xff] }
 0x349   :  { %576 = vmatpush.msrb.mxu0 %v551_v3 }
 0x34a   :  { %504 = vmatpush.msrb.mxu1 %v446_v26  ;;  %v591_v26 = vld [vmem:[%s1330_s17] sm:$0xff] }
 0x34b   :  { %652 = vmatmul.msk.f32.vlgmr.msra.gmra.mxu1 %vm101_vm0, %v776_v2  ;;  %v419_v2 = vld [vmem:[%s1325_s11 + $0x20] sm:$0xff]  ;;  %577 = vmatpush.msrb.mxu0 %v550_v5 }
 0x34c   :  { %486 = vmatpush.msrb.mxu3 %v419_v2  ;;  %505 = vmatpush.msrb.mxu1 %v445_v27  ;;  %v596_v2 = vld [vmem:[%s1330_s17 + $0x28] sm:$0xff]  ;;  %v412_v27 = vpop.f32.mrf.mxu0 }
 0x34d   :  { %578 = vmatpush.msrb.mxu0 %v549_v9 }
 0x34e   :  { %487 = vmatpush.msrb.mxu3 %v418_v22  ;;  %506 = vmatpush.msrb.mxu1 %v444_v28  ;;  %v595_v22 = vld [vmem:[%s1330_s17 + $0x20] sm:$0xff] }
 0x34f   :  { %579 = vmatpush.msrb.mxu0 %v548_v12 }
 0x350   :  { %488 = vmatpush.msrb.mxu3 %v417_v23  ;;  %507 = vmatpush.msrb.mxu1 %v443_v29 }
 0x352   :  { %508 = vmatpush.msrb.mxu1 %v442_v30  ;;  %v661_v30 = vld [vmem:[%s1329_s16] ss:$0 sm:$0xff] }
 0x353   :  { %653 = vmatmul.msk.f32.gmra.mxu1 %vm101_vm0, %v798_v8  ;;  %v416_v8 = vld [vmem:[%s1325_s11 + $0x8] sm:$0xff] }
 0x354   :  { %489 = vmatpush.msrb.mxu3 %v416_v8  ;;  %509 = vmatpush.msrb.mxu1 %v441_v31  ;;  %v594_v8 = vld [vmem:[%s1330_s17 + $0x18] sm:$0xff] }
 0x356   :  { %490 = vmatpush.msrb.mxu3 %v415_v24  ;;  %510 = vmatpush.msrb.mxu1 %v440_v32  ;;  %v593_v24 = vld [vmem:[%s1330_s17 + $0x10] sm:$0xff] }
 0x358   :  { %511 = vmatpush.msrb.mxu1 %v439_v33 }
 0x35a   :  { %512 = vmatpush.msrb.mxu1 %v438_v37 }
 0x35c   :  { %513 = vmatpush.msrb.mxu1 %v437_v38 }
 0x35e   :  { %514 = vmatpush.msrb.mxu1 %v436_v39 }
 0x360   :  { %515 = vmatpush.msrb.mxu1 %v435_v40 }
 0x362   :  { %516 = vmatpush.msrb.mxu1 %v434_v41 }
 0x364   :  { %517 = vmatpush.msrb.mxu1 %v433_v42 }
 0x366   :  { %518 = vmatpush.msrb.mxu1 %v432_v43 }
 0x3c0   :  { %v356_v34 = vpop.f32.mrf.mxu1 }
 0x3c1   :  { %391 = vmatmul.f32.vlgmr.msrb.gmra.mxu2 %v356_v34 }
 0x3c8   :  { %v466_v35 = vpop.f32.mrf.mxu1 }
 0x3c9   :  { %491 = vmatmul.f32.vlgmr.msrb.gmra.mxu3 %v466_v35  ;;  %v662_v35 = vld [vmem:[%s1331_s18] ss:$0 sm:$0xff] }
 0x3d0   :  { %v469_v36 = vpop.f32.mrf.mxu1 }
 0x3d1   :  { %494 = vmatmul.f32.gmra.mxu3 %v469_v36 }
 0x444   :  { %v392_v28 = vpop.f32.mrf.mxu2 }
 0x445   :  { %v413_v29 = vadd.f32 %v412_v27, %v392_v28 }
 0x44c   :  { %v492_v45 = vpop.f32.mrf.mxu3 }
 0x44d   :  { %v493_v46 = vadd.f32 %v659_v44, %v492_v45 }
 0x44f   :  { %v498_v47 = vmax.f32 %v493_v46, 0.0 }
 0x451   :  { %519 = vmatmul.f32.vlgmr.msrb.gmra.mxu1 %v498_v47 }
 0x454   :  { %v495_v48 = vpop.f32.mrf.mxu3 }
 0x455   :  { %v496_v49 = vadd.f32 %v659_v44, %v495_v48 }
 0x457   :  { %v499_v50 = vmax.f32 %v496_v49, 0.0 }
 0x459   :  { %522 = vmatmul.f32.gmra.mxu1 %v499_v50 }
 0x4ce   :  { %v520_v61 = vpop.f32.mrf.mxu1 }
 0x4cf   :  { %v521_v6 = vadd.f32 %v660_v1, %v520_v61 }
 0x4d1   :  { %v526_v11 = vmax.f32 %v521_v6, 0.0 }
 0x4d6   :  { %v523_v4 = vpop.f32.mrf.mxu1 }
 0x4d7   :  { %v524_v7 = vadd.f32 %v660_v1, %v523_v4 }
 0x4d9   :  { %v527_v10 = vmax.f32 %v524_v7, 0.0 }
 0x4db   :  { %542 = vmatpush.msra.mxu3 %v527_v10 }
 0x4dd   :  { %543 = vmatpush.msra.mxu3 %v526_v11 }
 0x4de   :  { %654 = vmatmul.msk.f32.vlgmr.msra.gmra.mxu3 %vm101_vm0, %v916_v60  ;;  %v603_v60 = vld [vmem:[%s1330_s17 + $0x60] sm:$0xff] }
 0x4df   :  { %614 = vmatpush.msra.mxu2 %v603_v60 }
 0x4e1   :  { %615 = vmatpush.msra.mxu2 %v602_v16 }
 0x4e3   :  { %616 = vmatpush.msra.mxu2 %v601_v17 }
 0x4e5   :  { %617 = vmatpush.msra.mxu2 %v600_v18 }
 0x4e7   :  { %618 = vmatpush.msra.mxu2 %v599_v19 }
 0x4e9   :  { %619 = vmatpush.msra.mxu2 %v598_v20 }
 0x4eb   :  { %620 = vmatpush.msra.mxu2 %v597_v21 }
 0x4ed   :  { %621 = vmatpush.msra.mxu2 %v596_v2 }
 0x4ef   :  { %622 = vmatpush.msra.mxu2 %v595_v22 }
 0x4f1   :  { %623 = vmatpush.msra.mxu2 %v594_v8 }
 0x4f3   :  { %624 = vmatpush.msra.mxu2 %v593_v24 }
 0x4f5   :  { %625 = vmatpush.msra.mxu2 %v592_v25 }
 0x4f7   :  { %626 = vmatpush.msra.mxu2 %v591_v26 }
 0x561   :  { %v545_v23 = vpop.f32.mrf.mxu3 }
 0x562   :  { %580 = vmatmul.f32.vlgmr.msrb.gmra.mxu0 %v545_v23 }
 0x5df   :  { %v581_v31 = vpop.f32.mrf.mxu0 }
 0x5e0   :  { %v584_v32 = vadd.f32 %v581_v31, %v413_v29 }
 0x5e2   :  { %v589_v33 = vadd.f32 %v661_v30, %v584_v32 }
 0x5e4   :  { %v590_v34 = vmax.f32 %v589_v33, 0.0 }
 0x5e6   :  { %627 = vmatmul.f32.vlgmr.msra.gmra.mxu2 %v590_v34 }
 0x669   :  { %v628_v36 = vpop.f32.mrf.mxu2 }
 0x66a   :  { %v629_v37 = vadd.f32 %v662_v35, %v628_v36 }
 0x66c   :  { %631 = vmax.xlane.f32.xlu0 %v629_v37 }
 0x6df   :  { %v632_v38 = vpop.xlane.xlu0 %631 }
 0x6e0   :  { %v633_v39 = vsub.f32 %v629_v37, %v632_v38 }
 0x6e2   :  { %v634_v40 = vmul.f32 1.442695, %v633_v39 }
 0x6e4   :  { %663 = vpow2.f32 %v634_v40 }
 0x6ea   :  { %v664_v41 = vpop.eup %663 }
 0x6eb   :  { %636 = vadd.xlane.f32.xlu0 %v664_v41 }
 0x75e   :  { %v637_v42 = vpop.xlane.xlu0 %636 }
 0x75f   :  { %665 = vlog2.f32 %v637_v42 }
 0x765   :  { %v666_v43 = vpop.eup %665 }
 0x766   :  { %v639_v44 = vmul.f32 0.6931472, %v666_v43 }
 0x768   :  { %v640_v45 = vsub.f32 %v633_v39, %v639_v44 }
 0x76a   :  { %641 = vst [vmem:[%s1332_s19] sm:$0xff] %v640_v45 }

</bundles_post_ra>
